<compile_context>
chip_gen: v7x
topology: tpu7x:2x2x1
jax: 0.10.0
libtpu: 0.0.40
codegen_flags: <defaults>
</compile_context>

<pallas_src>
import functools

import jax
import jax.numpy as jnp
from jax.experimental import pallas as pl
from jax.experimental.pallas import tpu as pltpu


def _round_up(x, m):
    return (x + m - 1) // m * m


def _tile_bytes(rows, cols, itemsize):
    # VMEM tiles pad the second-to-last dim to 8 sublanes, last dim to 128 lanes.
    return _round_up(max(rows, 1), 8) * _round_up(max(cols, 1), 128) * itemsize


def _softplus(x):
    # matches torch.nn.functional.softplus (beta=1); numerically-stable log1p
    # form (exp/log run on the EUP slot, effectively free next to the MXU).
    return jnp.maximum(x, 0.0) + jnp.log1p(jnp.exp(-jnp.abs(x)))


def pmlp_kernel(n_hidden_layers, out_len,
                s_ref, u_ref,
                w_s_ref, w_u_ref, b_in_ref,
                w_hid_ref, b_hid_ref,
                w_head_ref, b_head_ref,
                max_lv_ref, min_lv_ref,
                out_ref):
    wdt = w_hid_ref.dtype

    # input layer (split matmul == matmul of concat(s, u)) + ReLU
    h = jnp.dot(s_ref[...], w_s_ref[...], preferred_element_type=jnp.float32)
    h = h + jnp.dot(u_ref[...], w_u_ref[...], preferred_element_type=jnp.float32)
    h = jnp.maximum(h + b_in_ref[...], 0.0)

    # hidden layers + ReLU (n_hidden_layers is a static Python int)
    for i in range(n_hidden_layers):
        h = jnp.maximum(
            jnp.dot(h.astype(wdt), w_hid_ref[i],
                    preferred_element_type=jnp.float32) + b_hid_ref[i],
            0.0)

    # fused output heads: columns [0, OUT) = mu, [OUT, 2*OUT) = logvar
    fused = jnp.dot(h.astype(wdt), w_head_ref[...],
                    preferred_element_type=jnp.float32) + b_head_ref[...]

    # soft clamp of logvar between min_logvar and max_logvar, then exp.
    # Computed on all lanes (VPU/EUP are not the bottleneck) and applied only
    # to the var columns via a lane mask; mu columns pass through untouched.
    max_lv = max_lv_ref[...]
    min_lv = min_lv_ref[...]
    lv = max_lv - _softplus(max_lv - fused)
    lv = min_lv + _softplus(lv - min_lv)
    col = jax.lax.broadcasted_iota(jnp.int32, fused.shape, 1)
    out_ref[...] = jnp.where(col >= out_len, jnp.exp(lv), fused)


def pmlp_forward(s, u, params, *, n_hidden_layers, block_b=None,
                 compute_dtype=jnp.float32):
    """Pallas implementation of pmlp.forward. Returns (mu, var)."""
    # TODO(synk): n_hidden_layers == 0 would need the w_hid/b_hid inputs dropped.
    assert n_hidden_layers >= 1
    B, S_DIM = s.shape
    U_DIM = u.shape[-1]
    IN = S_DIM + U_DIM
    H = params["w_in"].shape[1]
    OUT = params["w_mu"].shape[1]
    NL = n_hidden_layers

    f32 = jnp.float32
    cdt = jnp.dtype(compute_dtype)
    itemsize = cdt.itemsize

    # ---- batch tile selection (explicit, VMEM-budgeted) --------------------
    if block_b is None:
        block_b = min(512, _round_up(B, 8))          # many grid steps for big B
    block_b = max(8, _round_up(block_b, 8))

    # Resident weights (worst case: 2 pipeline buffers) + double-buffered
    # per-step I/O tiles + the live hidden activation must fit the budget.
    weight_bytes = (_tile_bytes(S_DIM, H, itemsize) + _tile_bytes(U_DIM, H, itemsize)
                    + _tile_bytes(1, H, 4)
                    + NL * (_tile_bytes(H, H, itemsize) + _tile_bytes(1, H, 4))
                    + _tile_bytes(H, 2 * OUT, itemsize)
                    + 3 * _tile_bytes(1, 2 * OUT, 4))

    def step_bytes(bb):
        io = (_tile_bytes(bb, S_DIM, itemsize) + _tile_bytes(bb, U_DIM, itemsize)
              + _tile_bytes(bb, 2 * OUT, 4))
        return 2 * io + _tile_bytes(bb, H, 4)

    vmem_budget = 32 * 1024 * 1024                   # conservative: fits v7x (64 MiB)
    while block_b > 8 and 2 * weight_bytes + step_bytes(block_b) > vmem_budget // 2:
        block_b = max(8, _round_up(block_b // 2, 8))

    B_pad = _round_up(B, block_b)
    if B_pad != B:
        s = jnp.pad(s, ((0, B_pad - B), (0, 0)))
        u = jnp.pad(u, ((0, B_pad - B), (0, 0)))
    grid = (B_pad // block_b,)

    # ---- parameter repacking (weights -> compute dtype, biases stay f32) ---
    w_in = params["w_in"].astype(cdt)
    w_s, w_u = w_in[:S_DIM], w_in[S_DIM:]
    b_in = params["b_in"].astype(f32)
    w_hid = params["w_hid"].astype(cdt)
    b_hid = params["b_hid"].astype(f32)
    w_head = jnp.concatenate([params["w_mu"], params["w_var"]], axis=-1).astype(cdt)
    b_head = jnp.concatenate([params["b_mu"], params["b_var"]], axis=-1).astype(f32)
    max_lv2 = jnp.concatenate([params["max_logvar"]] * 2, axis=-1).astype(f32)
    min_lv2 = jnp.concatenate([params["min_logvar"]] * 2, axis=-1).astype(f32)
    s = s.astype(cdt)
    u = u.astype(cdt)

    args = (s, u, w_s, w_u, b_in, w_hid, b_hid, w_head, b_head, max_lv2, min_lv2)

    # ---- cost estimate (helps XLA schedule around the custom call) ---------
    flops = 2 * B_pad * (IN * H + NL * H * H + H * 2 * OUT)
    transcendentals = 5 * B_pad * 2 * OUT            # 2x softplus (exp+log) + exp
    bytes_accessed = (sum(int(a.size) * a.dtype.itemsize for a in args)
                      + B_pad * 2 * OUT * 4)
    cost = pl.CostEstimate(flops=flops, transcendentals=transcendentals,
                           bytes_accessed=bytes_accessed)

    kernel = functools.partial(pmlp_kernel, NL, OUT)

    def build(weight_pipeline_mode):
        kw = {} if weight_pipeline_mode is None else {
            "pipeline_mode": weight_pipeline_mode}

        def const_spec(*shape):
            return pl.BlockSpec(shape, lambda i: (0,) * len(shape), **kw)

        in_specs = [
            pl.BlockSpec((block_b, S_DIM), lambda i: (i, 0)),    # s tile
            pl.BlockSpec((block_b, U_DIM), lambda i: (i, 0)),    # u tile
            const_spec(S_DIM, H),                                # w_s
            const_spec(U_DIM, H),                                # w_u
            const_spec(1, H),                                    # b_in
            const_spec(NL, H, H),                                # w_hid (stacked)
            const_spec(NL, 1, H),                                # b_hid (stacked)
            const_spec(H, 2 * OUT),                              # w_head (mu|var)
            const_spec(1, 2 * OUT),                              # b_head
            const_spec(1, 2 * OUT),                              # max_logvar (dup)
            const_spec(1, 2 * OUT),                              # min_logvar (dup)
        ]
        out_specs = pl.BlockSpec((block_b, 2 * OUT), lambda i: (i, 0))
        return pl.pallas_call(
            kernel,
            out_shape=jax.ShapeDtypeStruct((B_pad, 2 * OUT), f32),
            grid_spec=pltpu.PrefetchScalarGridSpec(
                num_scalar_prefetch=0, grid=grid,
                in_specs=in_specs, out_specs=out_specs),
            compiler_params=pltpu.CompilerParams(
                dimension_semantics=("parallel",),
                vmem_limit_bytes=vmem_budget),
            cost_estimate=cost,
        )

    try:
        # Grid-invariant weights: request a single pipeline buffer.
        fused = build(pl.Buffered(1))(*args)
    except Exception:
        # Fallback if this jax build rejects pipeline_mode on BlockSpec.
        fused = build(None)(*args)

    mu = fused[:B, :OUT]
    var = fused[:B, OUT:]
    return mu, var


def init_params(key, input_len, output_len, n_hidden_layers, hidden):
    """Deterministic synthetic parameters (weights pre-transposed to (in, out))."""
    ks = jax.random.split(key, 8)
    scale = 0.1
    return {
        "w_in": scale * jax.random.normal(ks[0], (input_len, hidden), jnp.float32),
        "b_in": scale * jax.random.normal(ks[1], (1, hidden), jnp.float32),
        "w_hid": scale * jax.random.normal(ks[2], (n_hidden_layers, hidden, hidden), jnp.float32),
        "b_hid": scale * jax.random.normal(ks[3], (n_hidden_layers, 1, hidden), jnp.float32),
        "w_mu": scale * jax.random.normal(ks[4], (hidden, output_len), jnp.float32),
        "b_mu": scale * jax.random.normal(ks[5], (1, output_len), jnp.float32),
        "w_var": scale * jax.random.normal(ks[6], (hidden, output_len), jnp.float32),
        "b_var": scale * jax.random.normal(ks[7], (1, output_len), jnp.float32),
        # same init as the PyTorch module
        "max_logvar": jnp.ones((1, output_len), jnp.float32) / 2.0,
        "min_logvar": -jnp.ones((1, output_len), jnp.float32) * 10.0,
    }


def pmlp_reference(s, u, params, *, n_hidden_layers):
    """Pure-JAX reference mirroring the PyTorch forward pass."""
    x = jnp.concatenate([s, u], axis=-1).astype(jnp.float32)
    h = jnp.maximum(x @ params["w_in"] + params["b_in"], 0.0)
    for i in range(n_hidden_layers):
        h = jnp.maximum(h @ params["w_hid"][i] + params["b_hid"][i], 0.0)
    mu = h @ params["w_mu"] + params["b_mu"]
    logvar = h @ params["w_var"] + params["b_var"]
    logvar = params["max_logvar"] - jax.nn.softplus(params["max_logvar"] - logvar)
    logvar = params["min_logvar"] + jax.nn.softplus(logvar - params["min_logvar"])
    return mu, jnp.exp(logvar)


if __name__ == "__main__":
    # small shapes: batch=8, s_dim=6, u_dim=2 -> input_len=8, hidden=32, out=4
    B, S_DIM, U_DIM = 8, 6, 2
    INPUT_LEN = S_DIM + U_DIM
    OUTPUT_LEN = 4
    N_HIDDEN = 2
    HIDDEN = 32

    key = jax.random.PRNGKey(0)
    k_s, k_u, k_p = jax.random.split(key, 3)
    s = jax.random.normal(k_s, (B, S_DIM), jnp.float32)
    u = jax.random.normal(k_u, (B, U_DIM), jnp.float32)
    params = init_params(k_p, INPUT_LEN, OUTPUT_LEN, N_HIDDEN, HIDDEN)

    mu, var = pmlp_forward(s, u, params, n_hidden_layers=N_HIDDEN)
    jax.block_until_ready((mu, var))
    mu_ref, var_ref = pmlp_reference(s, u, params, n_hidden_layers=N_HIDDEN)
    assert jnp.allclose(mu, mu_ref, atol=1e-4, rtol=1e-4), "mu mismatch"
    assert jnp.allclose(var, var_ref, atol=1e-4, rtol=1e-4), "var mismatch"

    # second case: ragged batch (zero-pad path) + multi-step pipelined grid
    B2 = 50
    s2 = jax.random.normal(jax.random.PRNGKey(1), (B2, S_DIM), jnp.float32)
    u2 = jax.random.normal(jax.random.PRNGKey(2), (B2, U_DIM), jnp.float32)
    mu2, var2 = pmlp_forward(s2, u2, params, n_hidden_layers=N_HIDDEN, block_b=16)
    jax.block_until_ready((mu2, var2))
    mu2_ref, var2_ref = pmlp_reference(s2, u2, params, n_hidden_layers=N_HIDDEN)
    assert jnp.allclose(mu2, mu2_ref, atol=1e-4, rtol=1e-4), "mu mismatch (ragged)"
    assert jnp.allclose(var2, var2_ref, atol=1e-4, rtol=1e-4), "var mismatch (ragged)"

    print("KERNEL_OK")
</pallas_src>

<mosaic_0001>
module attributes {stable_mosaic.version = 11 : i64} {
  func.func @pmlp_kernel(%arg0: i32, %arg1: memref<8x6xf32, #tpu.memory_space<vmem>>, %arg2: memref<8x2xf32, #tpu.memory_space<vmem>>, %arg3: memref<6x32xf32, #tpu.memory_space<vmem>>, %arg4: memref<2x32xf32, #tpu.memory_space<vmem>>, %arg5: memref<1x32xf32, #tpu.memory_space<vmem>>, %arg6: memref<2x32x32xf32, #tpu.memory_space<vmem>>, %arg7: memref<2x1x32xf32, #tpu.memory_space<vmem>>, %arg8: memref<32x8xf32, #tpu.memory_space<vmem>>, %arg9: memref<1x8xf32, #tpu.memory_space<vmem>>, %arg10: memref<1x8xf32, #tpu.memory_space<vmem>>, %arg11: memref<1x8xf32, #tpu.memory_space<vmem>>, %arg12: memref<8x8xf32, #tpu.memory_space<vmem>>) attributes {dimension_semantics = [#tpu.dimension_semantics<parallel>], iteration_bounds = array<i64: 1>, scalar_prefetch = 0 : i64, scratch_operands = 0 : i64, tpu.core_type = #tpu.core_type<tc>, window_params = [{transform_indices = @transform_0, window_bounds = array<i64: 8, 6>}, {transform_indices = @transform_1, window_bounds = array<i64: 8, 2>}, {pipeline_mode = #tpu.pipeline_mode<synchronous>, transform_indices = @transform_2, window_bounds = array<i64: 6, 32>}, {pipeline_mode = #tpu.pipeline_mode<synchronous>, transform_indices = @transform_3, window_bounds = array<i64: 2, 32>}, {pipeline_mode = #tpu.pipeline_mode<synchronous>, transform_indices = @transform_4, window_bounds = array<i64: 1, 32>}, {pipeline_mode = #tpu.pipeline_mode<synchronous>, transform_indices = @transform_5, window_bounds = array<i64: 2, 32, 32>}, {pipeline_mode = #tpu.pipeline_mode<synchronous>, transform_indices = @transform_6, window_bounds = array<i64: 2, 1, 32>}, {pipeline_mode = #tpu.pipeline_mode<synchronous>, transform_indices = @transform_7, window_bounds = array<i64: 32, 8>}, {pipeline_mode = #tpu.pipeline_mode<synchronous>, transform_indices = @transform_8, window_bounds = array<i64: 1, 8>}, {pipeline_mode = #tpu.pipeline_mode<synchronous>, transform_indices = @transform_9, window_bounds = array<i64: 1, 8>}, {pipeline_mode = #tpu.pipeline_mode<synchronous>, transform_indices = @transform_10, window_bounds = array<i64: 1, 8>}, {transform_indices = @transform_11, window_bounds = array<i64: 8, 8>}]} {
    %c0 = arith.constant 0 : index
    %c0_0 = arith.constant 0 : index
    %0 = vector.load %arg1[%c0, %c0_0] : memref<8x6xf32, #tpu.memory_space<vmem>>, vector<8x6xf32>
    %c0_1 = arith.constant 0 : index
    %c0_2 = arith.constant 0 : index
    %1 = vector.load %arg3[%c0_1, %c0_2] : memref<6x32xf32, #tpu.memory_space<vmem>>, vector<6x32xf32>
    %cst = arith.constant dense<0.000000e+00> : vector<8x32xf32>
    %2 = tpu.matmul %0, %1, %cst {dimension_numbers = #tpu.dot_dimension_numbers<[1], [0], [0], [1], [0, 0, 1, 1], [], []>} : vector<8x6xf32>, vector<6x32xf32>, vector<8x32xf32> -> vector<8x32xf32>
    %c0_3 = arith.constant 0 : index
    %c0_4 = arith.constant 0 : index
    %3 = vector.load %arg2[%c0_3, %c0_4] : memref<8x2xf32, #tpu.memory_space<vmem>>, vector<8x2xf32>
    %c0_5 = arith.constant 0 : index
    %c0_6 = arith.constant 0 : index
    %4 = vector.load %arg4[%c0_5, %c0_6] : memref<2x32xf32, #tpu.memory_space<vmem>>, vector<2x32xf32>
    %cst_7 = arith.constant dense<0.000000e+00> : vector<8x32xf32>
    %5 = tpu.matmul %3, %4, %cst_7 {dimension_numbers = #tpu.dot_dimension_numbers<[1], [0], [0], [1], [0, 0, 1, 1], [], []>} : vector<8x2xf32>, vector<2x32xf32>, vector<8x32xf32> -> vector<8x32xf32>
    %6 = arith.addf %2, %5 : vector<8x32xf32>
    %c0_8 = arith.constant 0 : index
    %c0_9 = arith.constant 0 : index
    %7 = vector.load %arg5[%c0_8, %c0_9] : memref<1x32xf32, #tpu.memory_space<vmem>>, vector<1x32xf32>
    %8 = vector.broadcast %7 : vector<1x32xf32> to vector<8x32xf32>
    %9 = arith.addf %6, %8 : vector<8x32xf32>
    %cst_10 = arith.constant 0.000000e+00 : f32
    %10 = vector.broadcast %cst_10 : f32 to vector<8x32xf32>
    %11 = arith.maximumf %9, %10 : vector<8x32xf32>
    %c0_11 = arith.constant 0 : index
    %c0_12 = arith.constant 0 : index
    %c0_13 = arith.constant 0 : index
    %12 = vector.load %arg6[%c0_11, %c0_12, %c0_13] : memref<2x32x32xf32, #tpu.memory_space<vmem>>, vector<1x32x32xf32>
    %13 = vector.shape_cast %12 : vector<1x32x32xf32> to vector<32x32xf32>
    %cst_14 = arith.constant dense<0.000000e+00> : vector<8x32xf32>
    %14 = tpu.matmul %11, %13, %cst_14 {dimension_numbers = #tpu.dot_dimension_numbers<[1], [0], [0], [1], [0, 0, 1, 1], [], []>} : vector<8x32xf32>, vector<32x32xf32>, vector<8x32xf32> -> vector<8x32xf32>
    %c0_15 = arith.constant 0 : index
    %c0_16 = arith.constant 0 : index
    %c0_17 = arith.constant 0 : index
    %15 = vector.load %arg7[%c0_15, %c0_16, %c0_17] : memref<2x1x32xf32, #tpu.memory_space<vmem>>, vector<1x1x32xf32>
    %16 = vector.shape_cast %15 : vector<1x1x32xf32> to vector<1x32xf32>
    %17 = vector.broadcast %16 : vector<1x32xf32> to vector<8x32xf32>
    %18 = arith.addf %14, %17 : vector<8x32xf32>
    %cst_18 = arith.constant 0.000000e+00 : f32
    %19 = vector.broadcast %cst_18 : f32 to vector<8x32xf32>
    %20 = arith.maximumf %18, %19 : vector<8x32xf32>
    %c1 = arith.constant 1 : index
    %c0_19 = arith.constant 0 : index
    %c0_20 = arith.constant 0 : index
    %21 = vector.load %arg6[%c1, %c0_19, %c0_20] : memref<2x32x32xf32, #tpu.memory_space<vmem>>, vector<1x32x32xf32>
    %22 = vector.shape_cast %21 : vector<1x32x32xf32> to vector<32x32xf32>
    %cst_21 = arith.constant dense<0.000000e+00> : vector<8x32xf32>
    %23 = tpu.matmul %20, %22, %cst_21 {dimension_numbers = #tpu.dot_dimension_numbers<[1], [0], [0], [1], [0, 0, 1, 1], [], []>} : vector<8x32xf32>, vector<32x32xf32>, vector<8x32xf32> -> vector<8x32xf32>
    %c1_22 = arith.constant 1 : index
    %c0_23 = arith.constant 0 : index
    %c0_24 = arith.constant 0 : index
    %24 = vector.load %arg7[%c1_22, %c0_23, %c0_24] : memref<2x1x32xf32, #tpu.memory_space<vmem>>, vector<1x1x32xf32>
    %25 = vector.shape_cast %24 : vector<1x1x32xf32> to vector<1x32xf32>
    %26 = vector.broadcast %25 : vector<1x32xf32> to vector<8x32xf32>
    %27 = arith.addf %23, %26 : vector<8x32xf32>
    %cst_25 = arith.constant 0.000000e+00 : f32
    %28 = vector.broadcast %cst_25 : f32 to vector<8x32xf32>
    %29 = arith.maximumf %27, %28 : vector<8x32xf32>
    %c0_26 = arith.constant 0 : index
    %c0_27 = arith.constant 0 : index
    %30 = vector.load %arg8[%c0_26, %c0_27] : memref<32x8xf32, #tpu.memory_space<vmem>>, vector<32x8xf32>
    %cst_28 = arith.constant dense<0.000000e+00> : vector<8x8xf32>
    %31 = tpu.matmul %29, %30, %cst_28 {dimension_numbers = #tpu.dot_dimension_numbers<[1], [0], [0], [1], [0, 0, 1, 1], [], []>} : vector<8x32xf32>, vector<32x8xf32>, vector<8x8xf32> -> vector<8x8xf32>
    %c0_29 = arith.constant 0 : index
    %c0_30 = arith.constant 0 : index
    %32 = vector.load %arg9[%c0_29, %c0_30] : memref<1x8xf32, #tpu.memory_space<vmem>>, vector<1x8xf32>
    %33 = vector.broadcast %32 : vector<1x8xf32> to vector<8x8xf32>
    %34 = arith.addf %31, %33 : vector<8x8xf32>
    %c0_31 = arith.constant 0 : index
    %c0_32 = arith.constant 0 : index
    %35 = vector.load %arg10[%c0_31, %c0_32] : memref<1x8xf32, #tpu.memory_space<vmem>>, vector<1x8xf32>
    %c0_33 = arith.constant 0 : index
    %c0_34 = arith.constant 0 : index
    %36 = vector.load %arg11[%c0_33, %c0_34] : memref<1x8xf32, #tpu.memory_space<vmem>>, vector<1x8xf32>
    %37 = vector.broadcast %35 : vector<1x8xf32> to vector<8x8xf32>
    %38 = arith.subf %37, %34 : vector<8x8xf32>
    %cst_35 = arith.constant 0.000000e+00 : f32
    %39 = vector.broadcast %cst_35 : f32 to vector<8x8xf32>
    %40 = arith.maximumf %38, %39 : vector<8x8xf32>
    %41 = math.absf %38 : vector<8x8xf32>
    %cst_36 = arith.constant 0.000000e+00 : f32
    %42 = vector.broadcast %cst_36 : f32 to vector<8x8xf32>
    %43 = arith.subf %42, %41 : vector<8x8xf32>
    %44 = math.exp %43 : vector<8x8xf32>
    %45 = math.log1p %44 : vector<8x8xf32>
    %46 = arith.addf %40, %45 : vector<8x8xf32>
    %47 = vector.broadcast %35 : vector<1x8xf32> to vector<8x8xf32>
    %48 = arith.subf %47, %46 : vector<8x8xf32>
    %49 = vector.broadcast %36 : vector<1x8xf32> to vector<8x8xf32>
    %50 = arith.subf %48, %49 : vector<8x8xf32>
    %cst_37 = arith.constant 0.000000e+00 : f32
    %51 = vector.broadcast %cst_37 : f32 to vector<8x8xf32>
    %52 = arith.maximumf %50, %51 : vector<8x8xf32>
    %53 = math.absf %50 : vector<8x8xf32>
    %cst_38 = arith.constant 0.000000e+00 : f32
    %54 = vector.broadcast %cst_38 : f32 to vector<8x8xf32>
    %55 = arith.subf %54, %53 : vector<8x8xf32>
    %56 = math.exp %55 : vector<8x8xf32>
    %57 = math.log1p %56 : vector<8x8xf32>
    %58 = arith.addf %52, %57 : vector<8x8xf32>
    %59 = vector.broadcast %36 : vector<1x8xf32> to vector<8x8xf32>
    %60 = arith.addf %59, %58 : vector<8x8xf32>
    %61 = tpu.iota {dimensions = array<i32: 1>} : vector<8x8xi32>
    %c4_i32 = arith.constant 4 : i32
    %62 = vector.broadcast %c4_i32 : i32 to vector<8x8xi32>
    %63 = arith.cmpi sge, %61, %62 : vector<8x8xi32>
    %64 = math.exp %60 : vector<8x8xf32>
    %65 = arith.select %63, %64, %34 : vector<8x8xi1>, vector<8x8xf32>
    %c0_39 = arith.constant 0 : index
    %c0_40 = arith.constant 0 : index
    %66 = vector.load %arg12[%c0_39, %c0_40] : memref<8x8xf32, #tpu.memory_space<vmem>>, vector<8x8xf32>
    tpu.vector_store %arg12[%c0_39, %c0_40], %65 {strides = array<i32>} : memref<8x8xf32, #tpu.memory_space<vmem>>, vector<8x8xf32>,
    return
  }
  func.func @transform_0(%arg0: i32) -> (i32, i32) {
    %c0_i32 = arith.constant 0 : i32
    %c0_i32_0 = arith.constant 0 : i32
    return %arg0, %c0_i32 : i32, i32
  }
  func.func @transform_1(%arg0: i32) -> (i32, i32) {
    %c0_i32 = arith.constant 0 : i32
    %c0_i32_0 = arith.constant 0 : i32
    return %arg0, %c0_i32 : i32, i32
  }
  func.func @transform_2(%arg0: i32) -> (i32, i32) {
    %c0_i32 = arith.constant 0 : i32
    %c0_i32_0 = arith.constant 0 : i32
    %c0_i32_1 = arith.constant 0 : i32
    return %c0_i32, %c0_i32_0 : i32, i32
  }
  func.func @transform_3(%arg0: i32) -> (i32, i32) {
    %c0_i32 = arith.constant 0 : i32
    %c0_i32_0 = arith.constant 0 : i32
    %c0_i32_1 = arith.constant 0 : i32
    return %c0_i32, %c0_i32_0 : i32, i32
  }
  func.func @transform_4(%arg0: i32) -> (i32, i32) {
    %c0_i32 = arith.constant 0 : i32
    %c0_i32_0 = arith.constant 0 : i32
    %c0_i32_1 = arith.constant 0 : i32
    return %c0_i32, %c0_i32_0 : i32, i32
  }
  func.func @transform_5(%arg0: i32) -> (i32, i32, i32) {
    %c0_i32 = arith.constant 0 : i32
    %c0_i32_0 = arith.constant 0 : i32
    %c0_i32_1 = arith.constant 0 : i32
    %c0_i32_2 = arith.constant 0 : i32
    return %c0_i32, %c0_i32_0, %c0_i32_1 : i32, i32, i32
  }
  func.func @transform_6(%arg0: i32) -> (i32, i32, i32) {
    %c0_i32 = arith.constant 0 : i32
    %c0_i32_0 = arith.constant 0 : i32
    %c0_i32_1 = arith.constant 0 : i32
    %c0_i32_2 = arith.constant 0 : i32
    return %c0_i32, %c0_i32_0, %c0_i32_1 : i32, i32, i32
  }
  func.func @transform_7(%arg0: i32) -> (i32, i32) {
    %c0_i32 = arith.constant 0 : i32
    %c0_i32_0 = arith.constant 0 : i32
    %c0_i32_1 = arith.constant 0 : i32
    return %c0_i32, %c0_i32_0 : i32, i32
  }
  func.func @transform_8(%arg0: i32) -> (i32, i32) {
    %c0_i32 = arith.constant 0 : i32
    %c0_i32_0 = arith.constant 0 : i32
    %c0_i32_1 = arith.constant 0 : i32
    return %c0_i32, %c0_i32_0 : i32, i32
  }
  func.func @transform_9(%arg0: i32) -> (i32, i32) {
    %c0_i32 = arith.constant 0 : i32
    %c0_i32_0 = arith.constant 0 : i32
    %c0_i32_1 = arith.constant 0 : i32
    return %c0_i32, %c0_i32_0 : i32, i32
  }
  func.func @transform_10(%arg0: i32) -> (i32, i32) {
    %c0_i32 = arith.constant 0 : i32
    %c0_i32_0 = arith.constant 0 : i32
    %c0_i32_1 = arith.constant 0 : i32
    return %c0_i32, %c0_i32_0 : i32, i32
  }
  func.func @transform_11(%arg0: i32) -> (i32, i32) {
    %c0_i32 = arith.constant 0 : i32
    %c0_i32_0 = arith.constant 0 : i32
    return %arg0, %c0_i32 : i32, i32
  }
}

module attributes {stable_mosaic.version = 11 : i64} {
  func.func @pmlp_kernel(%arg0: i32, %arg1: memref<8x6xf32, #tpu.memory_space<vmem>>, %arg2: memref<8x2xf32, #tpu.memory_space<vmem>>, %arg3: memref<6x32xf32, #tpu.memory_space<vmem>>, %arg4: memref<2x32xf32, #tpu.memory_space<vmem>>, %arg5: memref<1x32xf32, #tpu.memory_space<vmem>>, %arg6: memref<2x32x32xf32, #tpu.memory_space<vmem>>, %arg7: memref<2x1x32xf32, #tpu.memory_space<vmem>>, %arg8: memref<32x8xf32, #tpu.memory_space<vmem>>, %arg9: memref<1x8xf32, #tpu.memory_space<vmem>>, %arg10: memref<1x8xf32, #tpu.memory_space<vmem>>, %arg11: memref<1x8xf32, #tpu.memory_space<vmem>>, %arg12: memref<8x8xf32, #tpu.memory_space<vmem>>) attributes {dimension_semantics = [#tpu.dimension_semantics<parallel>], iteration_bounds = array<i64: 1>, scalar_prefetch = 0 : i64, scratch_operands = 0 : i64, tpu.core_type = #tpu.core_type<tc>, window_params = [{transform_indices = @transform_0, window_bounds = array<i64: 8, 6>}, {transform_indices = @transform_1, window_bounds = array<i64: 8, 2>}, {pipeline_mode = #tpu.pipeline_mode<synchronous>, transform_indices = @transform_2, window_bounds = array<i64: 6, 32>}, {pipeline_mode = #tpu.pipeline_mode<synchronous>, transform_indices = @transform_3, window_bounds = array<i64: 2, 32>}, {pipeline_mode = #tpu.pipeline_mode<synchronous>, transform_indices = @transform_4, window_bounds = array<i64: 1, 32>}, {pipeline_mode = #tpu.pipeline_mode<synchronous>, transform_indices = @transform_5, window_bounds = array<i64: 2, 32, 32>}, {pipeline_mode = #tpu.pipeline_mode<synchronous>, transform_indices = @transform_6, window_bounds = array<i64: 2, 1, 32>}, {pipeline_mode = #tpu.pipeline_mode<synchronous>, transform_indices = @transform_7, window_bounds = array<i64: 32, 8>}, {pipeline_mode = #tpu.pipeline_mode<synchronous>, transform_indices = @transform_8, window_bounds = array<i64: 1, 8>}, {pipeline_mode = #tpu.pipeline_mode<synchronous>, transform_indices = @transform_9, window_bounds = array<i64: 1, 8>}, {pipeline_mode = #tpu.pipeline_mode<synchronous>, transform_indices = @transform_10, window_bounds = array<i64: 1, 8>}, {transform_indices = @transform_11, window_bounds = array<i64: 8, 8>}]} {
    %c0 = arith.constant 0 : index
    %c0_0 = arith.constant 0 : index
    %0 = vector.load %arg1[%c0, %c0_0] : memref<8x6xf32, #tpu.memory_space<vmem>>, vector<8x6xf32>
    %c0_1 = arith.constant 0 : index
    %c0_2 = arith.constant 0 : index
    %1 = vector.load %arg3[%c0_1, %c0_2] : memref<6x32xf32, #tpu.memory_space<vmem>>, vector<6x32xf32>
    %cst = arith.constant dense<0.000000e+00> : vector<8x32xf32>
    %2 = tpu.matmul %0, %1, %cst {dimension_numbers = #tpu.dot_dimension_numbers<[1], [0], [0], [1], [0, 0, 1, 1], [], []>} : vector<8x6xf32>, vector<6x32xf32>, vector<8x32xf32> -> vector<8x32xf32>
    %c0_3 = arith.constant 0 : index
    %c0_4 = arith.constant 0 : index
    %3 = vector.load %arg2[%c0_3, %c0_4] : memref<8x2xf32, #tpu.memory_space<vmem>>, vector<8x2xf32>
    %c0_5 = arith.constant 0 : index
    %c0_6 = arith.constant 0 : index
    %4 = vector.load %arg4[%c0_5, %c0_6] : memref<2x32xf32, #tpu.memory_space<vmem>>, vector<2x32xf32>
    %cst_7 = arith.constant dense<0.000000e+00> : vector<8x32xf32>
    %5 = tpu.matmul %3, %4, %cst_7 {dimension_numbers = #tpu.dot_dimension_numbers<[1], [0], [0], [1], [0, 0, 1, 1], [], []>} : vector<8x2xf32>, vector<2x32xf32>, vector<8x32xf32> -> vector<8x32xf32>
    %6 = arith.addf %2, %5 : vector<8x32xf32>
    %c0_8 = arith.constant 0 : index
    %c0_9 = arith.constant 0 : index
    %7 = vector.load %arg5[%c0_8, %c0_9] : memref<1x32xf32, #tpu.memory_space<vmem>>, vector<1x32xf32>
    %8 = vector.broadcast %7 : vector<1x32xf32> to vector<8x32xf32>
    %9 = arith.addf %6, %8 : vector<8x32xf32>
    %cst_10 = arith.constant 0.000000e+00 : f32
    %10 = vector.broadcast %cst_10 : f32 to vector<8x32xf32>
    %11 = arith.maximumf %9, %10 : vector<8x32xf32>
    %c0_11 = arith.constant 0 : index
    %c0_12 = arith.constant 0 : index
    %c0_13 = arith.constant 0 : index
    %12 = vector.load %arg6[%c0_11, %c0_12, %c0_13] : memref<2x32x32xf32, #tpu.memory_space<vmem>>, vector<1x32x32xf32>
    %13 = vector.shape_cast %12 : vector<1x32x32xf32> to vector<32x32xf32>
    %cst_14 = arith.constant dense<0.000000e+00> : vector<8x32xf32>
    %14 = tpu.matmul %11, %13, %cst_14 {dimension_numbers = #tpu.dot_dimension_numbers<[1], [0], [0], [1], [0, 0, 1, 1], [], []>} : vector<8x32xf32>, vector<32x32xf32>, vector<8x32xf32> -> vector<8x32xf32>
    %c0_15 = arith.constant 0 : index
    %c0_16 = arith.constant 0 : index
    %c0_17 = arith.constant 0 : index
    %15 = vector.load %arg7[%c0_15, %c0_16, %c0_17] : memref<2x1x32xf32, #tpu.memory_space<vmem>>, vector<1x1x32xf32>
    %16 = vector.shape_cast %15 : vector<1x1x32xf32> to vector<1x32xf32>
    %17 = vector.broadcast %16 : vector<1x32xf32> to vector<8x32xf32>
    %18 = arith.addf %14, %17 : vector<8x32xf32>
    %cst_18 = arith.constant 0.000000e+00 : f32
    %19 = vector.broadcast %cst_18 : f32 to vector<8x32xf32>
    %20 = arith.maximumf %18, %19 : vector<8x32xf32>
    %c1 = arith.constant 1 : index
    %c0_19 = arith.constant 0 : index
    %c0_20 = arith.constant 0 : index
    %21 = vector.load %arg6[%c1, %c0_19, %c0_20] : memref<2x32x32xf32, #tpu.memory_space<vmem>>, vector<1x32x32xf32>
    %22 = vector.shape_cast %21 : vector<1x32x32xf32> to vector<32x32xf32>
    %cst_21 = arith.constant dense<0.000000e+00> : vector<8x32xf32>
    %23 = tpu.matmul %20, %22, %cst_21 {dimension_numbers = #tpu.dot_dimension_numbers<[1], [0], [0], [1], [0, 0, 1, 1], [], []>} : vector<8x32xf32>, vector<32x32xf32>, vector<8x32xf32> -> vector<8x32xf32>
    %c1_22 = arith.constant 1 : index
    %c0_23 = arith.constant 0 : index
    %c0_24 = arith.constant 0 : index
    %24 = vector.load %arg7[%c1_22, %c0_23, %c0_24] : memref<2x1x32xf32, #tpu.memory_space<vmem>>, vector<1x1x32xf32>
    %25 = vector.shape_cast %24 : vector<1x1x32xf32> to vector<1x32xf32>
    %26 = vector.broadcast %25 : vector<1x32xf32> to vector<8x32xf32>
    %27 = arith.addf %23, %26 : vector<8x32xf32>
    %cst_25 = arith.constant 0.000000e+00 : f32
    %28 = vector.broadcast %cst_25 : f32 to vector<8x32xf32>
    %29 = arith.maximumf %27, %28 : vector<8x32xf32>
    %c0_26 = arith.constant 0 : index
    %c0_27 = arith.constant 0 : index
    %30 = vector.load %arg8[%c0_26, %c0_27] : memref<32x8xf32, #tpu.memory_space<vmem>>, vector<32x8xf32>
    %cst_28 = arith.constant dense<0.000000e+00> : vector<8x8xf32>
    %31 = tpu.matmul %29, %30, %cst_28 {dimension_numbers = #tpu.dot_dimension_numbers<[1], [0], [0], [1], [0, 0, 1, 1], [], []>} : vector<8x32xf32>, vector<32x8xf32>, vector<8x8xf32> -> vector<8x8xf32>
    %c0_29 = arith.constant 0 : index
    %c0_30 = arith.constant 0 : index
    %32 = vector.load %arg9[%c0_29, %c0_30] : memref<1x8xf32, #tpu.memory_space<vmem>>, vector<1x8xf32>
    %33 = vector.broadcast %32 : vector<1x8xf32> to vector<8x8xf32>
    %34 = arith.addf %31, %33 : vector<8x8xf32>
    %c0_31 = arith.constant 0 : index
    %c0_32 = arith.constant 0 : index
    %35 = vector.load %arg10[%c0_31, %c0_32] : memref<1x8xf32, #tpu.memory_space<vmem>>, vector<1x8xf32>
    %c0_33 = arith.constant 0 : index
    %c0_34 = arith.constant 0 : index
    %36 = vector.load %arg11[%c0_33, %c0_34] : memref<1x8xf32, #tpu.memory_space<vmem>>, vector<1x8xf32>
    %37 = vector.broadcast %35 : vector<1x8xf32> to vector<8x8xf32>
    %38 = arith.subf %37, %34 : vector<8x8xf32>
    %cst_35 = arith.constant 0.000000e+00 : f32
    %39 = vector.broadcast %cst_35 : f32 to vector<8x8xf32>
    %40 = arith.maximumf %38, %39 : vector<8x8xf32>
    %41 = math.absf %38 : vector<8x8xf32>
    %cst_36 = arith.constant 0.000000e+00 : f32
    %42 = vector.broadcast %cst_36 : f32 to vector<8x8xf32>
    %43 = arith.subf %42, %41 : vector<8x8xf32>
    %44 = math.exp %43 : vector<8x8xf32>
    %45 = math.log1p %44 : vector<8x8xf32>
    %46 = arith.addf %40, %45 : vector<8x8xf32>
    %47 = vector.broadcast %35 : vector<1x8xf32> to vector<8x8xf32>
    %48 = arith.subf %47, %46 : vector<8x8xf32>
    %49 = vector.broadcast %36 : vector<1x8xf32> to vector<8x8xf32>
    %50 = arith.subf %48, %49 : vector<8x8xf32>
    %cst_37 = arith.constant 0.000000e+00 : f32
    %51 = vector.broadcast %cst_37 : f32 to vector<8x8xf32>
    %52 = arith.maximumf %50, %51 : vector<8x8xf32>
    %53 = math.absf %50 : vector<8x8xf32>
    %cst_38 = arith.constant 0.000000e+00 : f32
    %54 = vector.broadcast %cst_38 : f32 to vector<8x8xf32>
    %55 = arith.subf %54, %53 : vector<8x8xf32>
    %56 = math.exp %55 : vector<8x8xf32>
    %57 = math.log1p %56 : vector<8x8xf32>
    %58 = arith.addf %52, %57 : vector<8x8xf32>
    %59 = vector.broadcast %36 : vector<1x8xf32> to vector<8x8xf32>
    %60 = arith.addf %59, %58 : vector<8x8xf32>
    %61 = tpu.iota {dimensions = array<i32: 1>} : vector<8x8xi32>
    %c4_i32 = arith.constant 4 : i32
    %62 = vector.broadcast %c4_i32 : i32 to vector<8x8xi32>
    %63 = arith.cmpi sge, %61, %62 : vector<8x8xi32>
    %64 = math.exp %60 : vector<8x8xf32>
    %65 = arith.select %63, %64, %34 : vector<8x8xi1>, vector<8x8xf32>
    %c0_39 = arith.constant 0 : index
    %c0_40 = arith.constant 0 : index
    %66 = vector.load %arg12[%c0_39, %c0_40] : memref<8x8xf32, #tpu.memory_space<vmem>>, vector<8x8xf32>
    tpu.vector_store %arg12[%c0_39, %c0_40], %65 {strides = array<i32>} : memref<8x8xf32, #tpu.memory_space<vmem>>, vector<8x8xf32>,
    return
  }
  func.func @transform_0(%arg0: i32) -> (i32, i32) {
    %c0_i32 = arith.constant 0 : i32
    %c0_i32_0 = arith.constant 0 : i32
    return %arg0, %c0_i32 : i32, i32
  }
  func.func @transform_1(%arg0: i32) -> (i32, i32) {
    %c0_i32 = arith.constant 0 : i32
    %c0_i32_0 = arith.constant 0 : i32
    return %arg0, %c0_i32 : i32, i32
  }
  func.func @transform_2(%arg0: i32) -> (i32, i32) {
    %c0_i32 = arith.constant 0 : i32
    %c0_i32_0 = arith.constant 0 : i32
    %c0_i32_1 = arith.constant 0 : i32
    return %c0_i32, %c0_i32_0 : i32, i32
  }
  func.func @transform_3(%arg0: i32) -> (i32, i32) {
    %c0_i32 = arith.constant 0 : i32
    %c0_i32_0 = arith.constant 0 : i32
    %c0_i32_1 = arith.constant 0 : i32
    return %c0_i32, %c0_i32_0 : i32, i32
  }
  func.func @transform_4(%arg0: i32) -> (i32, i32) {
    %c0_i32 = arith.constant 0 : i32
    %c0_i32_0 = arith.constant 0 : i32
    %c0_i32_1 = arith.constant 0 : i32
    return %c0_i32, %c0_i32_0 : i32, i32
  }
  func.func @transform_5(%arg0: i32) -> (i32, i32, i32) {
    %c0_i32 = arith.constant 0 : i32
    %c0_i32_0 = arith.constant 0 : i32
    %c0_i32_1 = arith.constant 0 : i32
    %c0_i32_2 = arith.constant 0 : i32
    return %c0_i32, %c0_i32_0, %c0_i32_1 : i32, i32, i32
  }
  func.func @transform_6(%arg0: i32) -> (i32, i32, i32) {
    %c0_i32 = arith.constant 0 : i32
    %c0_i32_0 = arith.constant 0 : i32
    %c0_i32_1 = arith.constant 0 : i32
    %c0_i32_2 = arith.constant 0 : i32
    return %c0_i32, %c0_i32_0, %c0_i32_1 : i32, i32, i32
  }
  func.func @transform_7(%arg0: i32) -> (i32, i32) {
    %c0_i32 = arith.constant 0 : i32
    %c0_i32_0 = arith.constant 0 : i32
    %c0_i32_1 = arith.constant 0 : i32
    return %c0_i32, %c0_i32_0 : i32, i32
  }
  func.func @transform_8(%arg0: i32) -> (i32, i32) {
    %c0_i32 = arith.constant 0 : i32
    %c0_i32_0 = arith.constant 0 : i32
    %c0_i32_1 = arith.constant 0 : i32
    return %c0_i32, %c0_i32_0 : i32, i32
  }
  func.func @transform_9(%arg0: i32) -> (i32, i32) {
    %c0_i32 = arith.constant 0 : i32
    %c0_i32_0 = arith.constant 0 : i32
    %c0_i32_1 = arith.constant 0 : i32
    return %c0_i32, %c0_i32_0 : i32, i32
  }
  func.func @transform_10(%arg0: i32) -> (i32, i32) {
    %c0_i32 = arith.constant 0 : i32
    %c0_i32_0 = arith.constant 0 : i32
    %c0_i32_1 = arith.constant 0 : i32
    return %c0_i32, %c0_i32_0 : i32, i32
  }
  func.func @transform_11(%arg0: i32) -> (i32, i32) {
    %c0_i32 = arith.constant 0 : i32
    %c0_i32_0 = arith.constant 0 : i32
    return %arg0, %c0_i32 : i32, i32
  }
}

</mosaic_0001>

<bundles_post_ra>
// kernel: tpu_custom_call.1
= control target key start
LH: loop header
LB: loop body
LE: loop exit
PB: predicated region body
PF: predicated region fallthrough
CT: control target
= control target key end

     0   :  { %16 = vsyncpa [#allocation3], 0  ;;  %s1055_s0 = inlined_call_operand.hbm [shape: f32[8,6], index: 0, kind: input, shape index: {}]   ;;  %s1056_s1 = inlined_call_operand.vmem [shape: f32[8,2], index: 1, kind: input, shape index: {}]   ;;  %s1057_s2 = inlined_call_operand.hbm [shape: f32[6,32], index: 2, kind: input, shape index: {}]   ;;  %s1058_s3 = inlined_call_operand.hbm [shape: f32[2,32], index: 3, kind: input, shape index: {}]   ;;  %s1059_s4 = inlined_call_operand.hbm [shape: f32[1,32], index: 4, kind: input, shape index: {}]   ;;  %s1060_s5 = inlined_call_operand.vmem [shape: f32[2,32,32], index: 5, kind: input, shape index: {}]   ;;  %s1061_s6 = inlined_call_operand.hbm [shape: f32[2,1,32], index: 6, kind: input, shape index: {}]   ;;  %s1062_s7 = inlined_call_operand.vmem [shape: f32[32,8], index: 7, kind: input, shape index: {}]   ;;  %s1063_s8 = inlined_call_operand.vmem [shape: f32[1,8], index: 8, kind: input, shape index: {}]   ;;  %s1064_s9 = inlined_call_operand.vmem [shape: f32[1,8], index: 9, kind: input, shape index: {}]   ;;  %s1065_s10 = inlined_call_operand.vmem [shape: f32[1,8], index: 10, kind: input, shape index: {}]   ;;  %s1066_s11 = inlined_call_operand.hbm [shape: f32[8,8], index: 11, kind: output, shape index: {}]  }
   0x1   :  { %17 = vsyncpa [#allocation6], 0 }
   0x2   :  { %18 = vsyncpa [#allocation9], 0 }
   0x3   :  { %19 = vsyncpa [#allocation4], 0  ;;  %s856_s17 = smov [#allocation5]   ;;  %s857_s19 = smov [#allocation8]  }
   0x4   :  { %s38_s18 = sshll.u32 %s856_s17, 4  ;;  %s58_s20 = sshll.u32 %s857_s19, 4  ;;  %s39_s18 = int_to_ptr.vmem [resolvable:$true] %s38_s18  ;;  %s59_s20 = int_to_ptr.vmem [resolvable:$true] %s58_s20 }
   0x5   :  { %s716_s23 = scalar_lea.hbm %s1057_s2, 128 }
   0x6   :  { %p717_p0 = scmp.ne.s32.totalorder %s1057_s2, %s716_s23  ;;  %p720_p1 = scmp.lt.u32.totalorder %s716_s23, %s1057_s2 }
   0x8   :  { %p722_p2 = pnand %p720_p1, %p717_p0 }
   0xa   :  { %725 = shalt.err (!%p722_p2)
}
   0xb   :  { %s726_s28 = scalar_lea.vmem %s39_s18, 128  ;;  %p731_p4 = scmp.lt.s32.totalorder %s39_s18, %s39_s18 }
   0xc   :  { %p727_p3 = scmp.ne.s32.totalorder %s39_s18, %s726_s28  ;;  %p732_p5 = scmp.lt.s32.totalorder %s726_s28, %s726_s28 }
   0xe   :  { %p733_p6 = por %p732_p5, %p731_p4 }
  0x10   :  { %p734_p7 = pnand %p733_p6, %p727_p3 }
  0x12   :  { %737 = shalt.err (!%p734_p7)
}
  0x13   :  { %41 = dma.hbm_to_vmem [thread:$0]  %s1057_s2, 128, %s39_s18, [#allocation6]  }
  0x14   :  { %s738_s14 = scalar_lea.hbm %s1059_s4, 16 }
  0x15   :  { %p739_p8 = scmp.ne.s32.totalorder %s1059_s4, %s738_s14  ;;  %p742_p9 = scmp.lt.u32.totalorder %s738_s14, %s1059_s4 }
  0x17   :  { %p744_p10 = pnand %p742_p9, %p739_p8 }
  0x19   :  { %747 = shalt.err (!%p744_p10)
}
  0x1a   :  { %s748_s21 = scalar_lea.vmem %s59_s20, 16  ;;  %s752_s22 = scalar_lea.vmem %s59_s20, 32 }
  0x1b   :  { %p749_p11 = scmp.ne.s32.totalorder %s59_s20, %s748_s21  ;;  %p753_p12 = scmp.lt.s32.totalorder %s59_s20, %s59_s20 }
  0x1c   :  { %p754_p13 = scmp.lt.s32.totalorder %s752_s22, %s748_s21 }
  0x1e   :  { %p755_p0 = por %p754_p13, %p753_p12 }
  0x20   :  { %p756_p1 = pnand %p755_p0, %p749_p11 }
  0x22   :  { %759 = shalt.err (!%p756_p1)
}
  0x23   :  { %61 = dma.hbm_to_vmem [thread:$0]  %s1059_s4, 16, %s59_s20, [#allocation9]  }
  0x24   :  { %s858_s23 = smov [#allocation2]   ;;  %s859_s25 = smov [#allocation7]  }
  0x25   :  { %s26_s24 = sshll.u32 %s858_s23, 4  ;;  %s48_s26 = sshll.u32 %s859_s25, 4  ;;  %s27_s24 = int_to_ptr.vmem [resolvable:$true] %s26_s24  ;;  %s49_s26 = int_to_ptr.vmem [resolvable:$true] %s48_s26 }
  0x26   :  { %s760_s29 = scalar_lea.hbm %s1055_s0, 128 }
  0x27   :  { %p761_p2 = scmp.ne.s32.totalorder %s1055_s0, %s760_s29  ;;  %p764_p3 = scmp.lt.u32.totalorder %s760_s29, %s1055_s0 }
  0x29   :  { %p766_p4 = pnand %p764_p3, %p761_p2 }
  0x2b   :  { %769 = shalt.err (!%p766_p4)
}
  0x2c   :  { %s770_s4 = scalar_lea.vmem %s27_s24, 128  ;;  %p775_p6 = scmp.lt.s32.totalorder %s27_s24, %s27_s24 }
  0x2d   :  { %p771_p5 = scmp.ne.s32.totalorder %s27_s24, %s770_s4  ;;  %p776_p7 = scmp.lt.s32.totalorder %s770_s4, %s770_s4 }
  0x2f   :  { %p777_p8 = por %p776_p7, %p775_p6 }
  0x31   :  { %p778_p9 = pnand %p777_p8, %p771_p5 }
  0x33   :  { %781 = shalt.err (!%p778_p9)
}
  0x34   :  { %29 = dma.hbm_to_vmem [thread:$0]  %s1055_s0, 128, %s27_s24, [#allocation3]  }
  0x35   :  { %s782_s19 = scalar_lea.hbm %s1058_s3, 32 }
  0x36   :  { %p783_p10 = scmp.ne.s32.totalorder %s1058_s3, %s782_s19  ;;  %p786_p11 = scmp.lt.u32.totalorder %s782_s19, %s1058_s3 }
  0x38   :  { %p788_p12 = pnand %p786_p11, %p783_p10 }
  0x3a   :  { %791 = shalt.err (!%p788_p12)
}
  0x3b   :  { %s792_s23 = scalar_lea.vmem %s49_s26, 32  ;;  %p797_p0 = scmp.lt.s32.totalorder %s49_s26, %s49_s26 }
  0x3c   :  { %p793_p13 = scmp.ne.s32.totalorder %s49_s26, %s792_s23  ;;  %p798_p1 = scmp.lt.s32.totalorder %s792_s23, %s792_s23 }
  0x3e   :  { %p799_p2 = por %p798_p1, %p797_p0 }
  0x40   :  { %p800_p3 = pnand %p799_p2, %p793_p13 }
  0x42   :  { %803 = shalt.err (!%p800_p3)
}
  0x43   :  { %51 = dma.hbm_to_vmem [thread:$0]  %s1058_s3, 32, %s49_s26, [#allocation6]  }
  0x44   :  { %s860_s25 = smov [#allocation10]   ;;  %s804_s30 = scalar_lea.hbm %s1061_s6, 32 }
  0x45   :  { %s69_s27 = sshll.u32 %s860_s25, 4  ;;  %p805_p4 = scmp.ne.s32.totalorder %s1061_s6, %s804_s30  ;;  %s70_s27 = int_to_ptr.vmem [resolvable:$true] %s69_s27 }
  0x46   :  { %p808_p5 = scmp.lt.u32.totalorder %s804_s30, %s1061_s6 }
  0x48   :  { %p810_p6 = pnand %p808_p5, %p805_p4 }
  0x4a   :  { %813 = shalt.err (!%p810_p6)
}
  0x4b   :  { %s814_s20 = scalar_lea.vmem %s70_s27, 32  ;;  %p819_p8 = scmp.lt.s32.totalorder %s70_s27, %s70_s27 }
  0x4c   :  { %p815_p7 = scmp.ne.s32.totalorder %s70_s27, %s814_s20  ;;  %p820_p9 = scmp.lt.s32.totalorder %s814_s20, %s814_s20 }
  0x4e   :  { %p821_p10 = por %p820_p9, %p819_p8 }
  0x50   :  { %p822_p11 = pnand %p821_p10, %p815_p7 }
  0x52   :  { %825 = shalt.err (!%p822_p11)
}
  0x53   :  { %s861_s3 = smov 16   ;;  %s862_s26 = smov 1  }
  0x54   :  { %75 = dma.hbm_to_vmem [thread:$0]  %s1061_s6, 32, %s70_s27, [#allocation9], %s861_s3, %s861_s3, %s862_s26  }
  0x55   :  { %848 = dma.done.wait [#allocation3], 128  }
  0x56   :  { %849 = vsyncadd [#allocation3], 4294967168 }
  0x57   :  { %850 = dma.done.wait [#allocation6], 160  }
  0x58   :  { %851 = vsyncadd [#allocation6], 4294967136 }
  0x59   :  { %852 = dma.done.wait [#allocation9], 48  }
  0x5a   :  { %853 = vsyncadd [#allocation9], 4294967248  ;;  %v863_v0 = vmov 0.0   ;;  %vm864_vm0 = vmmov 0   ;;  %vm107_vm1 = vcmask 1041408   ;;  %vm103_vm2 = vcmask 15360  }
  0x5b   :  { %634 = vmatprep.subr.mxu1 %v863_v0  ;;  %636 = vmatprep.mubr.msk.f32.mxu1 %vm864_vm0, %v863_v0  ;;  %v102_v1 = vld [vmem:[#allocation7] sm:$0x3]  ;;  %v101_v2 = vld [vmem:[%s1056_s1] sm:$0xff]  ;;  %v100_v3 = vld [vmem:[#allocation5] sm:$0x3f]  ;;  %vm185_vm3 = vcmask 1045504  }
  0x5c   :  { %652 = vmatprep.mubr.msk.f32.mxu0 %vm864_vm0, %v863_v0  ;;  %635 = vmatpush3.msk.msra.mxu1 %vm107_vm1, %v102_v1  ;;  %v99_v4 = vld [vmem:[#allocation2] sm:$0xff]  ;;  %vm181_vm4 = vcmask 48128   ;;  %v269_v6 = vld [vmem:[%s1060_s5 + $0x8] sm:$0xff]  ;;  %v865_v7 = vmov 0.0|0.0   ;;  %v270_v9 = vld [vmem:[%s1060_s5 + $0x10] sm:$0xff]  ;;  %vm279_vm5 = vcmask 261120  }
  0x5d   :  { %637 = vmatmul.mubr.msk.f32.vlgmr.msra.gmra.mrb[0].mxu1 %vm103_vm2, %v101_v2  ;;  %639 = vmatprep.subr.mxu1 %v863_v0  ;;  %v268_v5 = vld [vmem:[%s1060_s5] sm:$0xff]  ;;  %v271_v10 = vld [vmem:[%s1060_s5 + $0x18] sm:$0xff]  ;;  %v606_v13 = vld [vmem:[%s1060_s5 + $0x28] sm:$0xff]  ;;  %vm579_vm9 = vcmask 64512  }
  0x5e   :  { %640 = vmatpush3.msk.msra.mxu1 %vm185_vm3, %v100_v3  ;;  %641 = vmatprep.mubr.msk.f32.mxu1 %vm864_vm0, %v863_v0  ;;  %v678_v8 = vpack.c.bf16 %v269_v6, %v268_v5  ;;  %v681_v11 = vpack.c.bf16 %v271_v10, %v270_v9  ;;  %v605_v12 = vld [vmem:[%s1060_s5 + $0x20] sm:$0xff]  ;;  %v602_v18 = vld [vmem:[#allocation8] ss:$0 sm:$0xff]  ;;  %v608_v24 = vld [vmem:[%s1060_s5 + $0x38] sm:$0xff] }
  0x5f   :  { %677 = vmatprep.subr.bf16.mxu0 %v865_v7  ;;  %683 = vmatprep.subr.bf16.mxu1 %v865_v7  ;;  %v684_v14 = vpack.c.bf16 %v606_v13, %v605_v12  ;;  %v607_v23 = vld [vmem:[%s1060_s5 + $0x30] sm:$0xff]  ;;  %v441_v26 = vld [vmem:[%s1062_s7] sm:$0xff]  ;;  %v442_v27 = vld [vmem:[%s1062_s7 + $0x8] sm:$0xff] }
  0x60   :  { %679 = vmatpush3.bf16.msra.mxu0 %v678_v8  ;;  %v687_v25 = vpack.c.bf16 %v608_v24, %v607_v23  ;;  %v690_v28 = vpack.c.bf16 %v442_v27, %v441_v26  ;;  %v603_v29 = vld [vmem:[#allocation10] ss:$0 sm:$0xff]  ;;  %v444_v35 = vld [vmem:[%s1062_s7 + $0x18] sm:$0xff]  ;;  %v609_v37 = vld [vmem:[#allocation10 + $0x1] ss:$0 sm:$0xff] }
  0x61   :  { %642 = vmatmul.mubr.msk.f32.vlgmr.msra.gmra.mrb[2].mxu1 %vm181_vm4, %v99_v4  ;;  %680 = vmatprep.subr.bf16.mxu0 %v865_v7  ;;  %v443_v34 = vld [vmem:[%s1062_s7 + $0x10] sm:$0xff]  ;;  %v611_v42 = vld [vmem:[%s1063_s8] ss:$0 sm:$0xff] }
  0x62   :  { %663 = vmatprep.mubr.msk.f32.mxu1 %vm864_vm0, %v863_v0  ;;  %685 = vmatpush3.bf16.msra.mxu1 %v684_v14  ;;  %v693_v36 = vpack.c.bf16 %v444_v35, %v443_v34  ;;  %v613_v44 = vld [vmem:[%s1064_s9] ss:$0 sm:$0xff]  ;;  %s866_s9 = smov [#allocation11]  }
  0x63   :  { %686 = vmatprep.subr.bf16.mxu1 %v865_v7  ;;  %v614_v62 = vld [vmem:[%s1065_s10] ss:$0 sm:$0xff]  ;;  %s587_s10 = sshll.u32 %s866_s9, 4  ;;  %s588_s10 = int_to_ptr.vmem [resolvable:$true] %s587_s10 }
  0x64   :  { %682 = vmatpush3.bf16.msra.mxu0 %v681_v11  ;;  %s826_s22 = scalar_lea.vmem %s588_s10, 128  ;;  %p831_p13 = scmp.lt.s32.totalorder %s588_s10, %s588_s10 }
  0x65   :  { %689 = vmatprep.subr.bf16.mxu0 %v865_v7  ;;  %p827_p12 = scmp.ne.s32.totalorder %s588_s10, %s826_s22  ;;  %p832_p0 = scmp.lt.s32.totalorder %s826_s22, %s826_s22 }
  0x66   :  { %688 = vmatpush3.bf16.msra.mxu1 %v687_v25 }
  0x67   :  { %p833_p1 = por %p832_p0, %p831_p13 }
  0x69   :  { %p834_p2 = pnand %p833_p1, %p827_p12 }
 0x130   :  { %v177_v15 = vpop.f32.mrb[0].mxu1 }
 0x131   :  { %v638_v16 = vpop.f32.mrb[1].mxu1 }
 0x134   :  { %v255_v17 = vpop.f32.mrb[2].mxu1 }
 0x135   :  { %v256_v19 = vadd.f32 %v255_v17, %v177_v15  ;;  %v643_v20 = vpop.f32.mrb[3].mxu1  ;;  %v573_v17 = vlaneseq }
 0x137   :  { %v266_v21 = vadd.f32 %v602_v18, %v256_v19  ;;  %v574_v18 = vand.u32 127, %v573_v17 }
 0x139   :  { %v267_v22 = vmax.f32 %v266_v21, 0.0  ;;  %vm575_vm8 = vcmp.ge.s32.totalorder %v574_v18, 4 }
 0x13b   :  { %653 = vmatmul.mubr.msk.f32.vlgmr.msra.gmra.mrb[0].mxu0 %vm279_vm5, %v267_v22 }
 0x13c   :  { %674 = vmatprep.mubr.msk.f32.mxu0 %vm864_vm0, %v863_v0  ;;  %691 = vmatpush3.bf16.msra.mxu0 %v690_v28 }
 0x13d   :  { %692 = vmatprep.subr.bf16.mxu0 %v865_v7 }
 0x140   :  { %694 = vmatpush3.bf16.msra.mxu0 %v693_v36 }
 0x20e   :  { %v349_v30 = vpop.f32.mrb[0].mxu0 }
 0x20f   :  { %v350_v31 = vadd.f32 %v603_v29, %v349_v30  ;;  %v654_v32 = vpop.f32.mrb[1].mxu0 }
 0x211   :  { %v353_v33 = vmax.f32 %v350_v31, 0.0 }
 0x213   :  { %664 = vmatmul.mubr.msk.f32.vlgmr.msra.gmra.mrb[4].mxu1 %vm279_vm5, %v353_v33 }
 0x2e6   :  { %v436_v38 = vpop.f32.mrb[4].mxu1 }
 0x2e7   :  { %v437_v39 = vadd.f32 %v609_v37, %v436_v38  ;;  %v665_v40 = vpop.f32.mrb[5].mxu1 }
 0x2e9   :  { %v440_v41 = vmax.f32 %v437_v39, 0.0 }
 0x2eb   :  { %675 = vmatmul.mubr.msk.f32.vlgmr.msra.gmra.mrb[2].mxu0 %vm279_vm5, %v440_v41 }
 0x3be   :  { %v521_v43 = vpop.f32.mrb[2].mxu0 }
 0x3bf   :  { %v522_v45 = vadd.f32 %v611_v42, %v521_v43  ;;  %v676_v46 = vpop.f32.mrb[3].mxu0 }
 0x3c1   :  { %v533_v47 = vsub.f32 %v613_v44, %v522_v45 }
 0x3c3   :  { %v535_v48 = vand.u32 2147483647, %v533_v47  ;;  %v534_v59 = vmax.f32 %v533_v47, 0.0 }
 0x3c5   :  { %v536_v49 = vsub.f32 0.0, %v535_v48 }
 0x3c7   :  { %v537_v50 = vmul.f32 1.442695, %v536_v49 }
 0x3c9   :  { %706 = vpow2.f32 %v537_v50 }
 0x3d3   :  { %v707_v51 = vpop.eup %706 }
 0x3d4   :  { %v539_v52 = vadd.f32 1.0, %v707_v51  ;;  %v542_v53 = vmul.f32 -0.5, %v707_v51  ;;  %v545_v55 = vand.u32 2147483647, %v707_v51 }
 0x3d6   :  { %708 = vlog2.f32 %v539_v52  ;;  %v543_v54 = vadd.f32 1.0, %v542_v53  ;;  %vm546_vm6 = vcmp.lt.f32.partialorder %v545_v55, 0.0004427343 }
 0x3d8   :  { %v544_v58 = vmul.f32 %v707_v51, %v543_v54 }
 0x3e0   :  { %v709_v56 = vpop.eup %708 }
 0x3e1   :  { %v541_v57 = vmul.f32 0.6931472, %v709_v56 }
 0x3e3   :  { %v547_v60 = vsel %vm546_vm6, %v544_v58, %v541_v57 }
 0x3e4   :  { %v548_v61 = vadd.f32 %v547_v60, %v534_v59 }
 0x3e6   :  { %v549_v63 = vsub.f32 %v613_v44, %v548_v61 }
 0x3e8   :  { %v556_v0 = vsub.f32 %v549_v63, %v614_v62 }
 0x3ea   :  { %v558_v1 = vand.u32 2147483647, %v556_v0  ;;  %v557_v12 = vmax.f32 %v556_v0, 0.0 }
 0x3ec   :  { %v559_v2 = vsub.f32 0.0, %v558_v1 }
 0x3ee   :  { %v560_v3 = vmul.f32 1.442695, %v559_v2 }
 0x3f0   :  { %710 = vpow2.f32 %v560_v3 }
 0x3fa   :  { %v711_v4 = vpop.eup %710 }
 0x3fb   :  { %v562_v5 = vadd.f32 1.0, %v711_v4  ;;  %v565_v6 = vmul.f32 -0.5, %v711_v4  ;;  %v568_v8 = vand.u32 2147483647, %v711_v4 }
 0x3fd   :  { %712 = vlog2.f32 %v562_v5  ;;  %v566_v7 = vadd.f32 1.0, %v565_v6  ;;  %vm569_vm7 = vcmp.lt.f32.partialorder %v568_v8, 0.0004427343 }
 0x3ff   :  { %v567_v11 = vmul.f32 %v711_v4, %v566_v7 }
 0x407   :  { %v713_v9 = vpop.eup %712 }
 0x408   :  { %v564_v10 = vmul.f32 0.6931472, %v713_v9 }
 0x40a   :  { %v570_v13 = vsel %vm569_vm7, %v567_v11, %v564_v10 }
 0x40b   :  { %v571_v14 = vadd.f32 %v570_v13, %v557_v12 }
 0x40d   :  { %v572_v15 = vadd.f32 %v614_v62, %v571_v14 }
 0x40f   :  { %v576_v16 = vmul.f32 1.442695, %v572_v15 }
 0x411   :  { %714 = vpow2.f32 %v576_v16 }
 0x41b   :  { %v715_v19 = vpop.eup %714 }
 0x41c   :  { %v578_v20 = vsel %vm575_vm8, %v715_v19, %v522_v45 }
 0x41d   :  { %580 = vst.msk [vmem:[#allocation11] sm:$0xff] %vm579_vm9, %v578_v20 }
 0x41e   :  { %837 = shalt.err (!%p834_p2)
}
 0x41f   :  { %s838_s18 = scalar_lea.hbm %s1066_s11, 128 }
 0x420   :  { %p839_p3 = scmp.ne.s32.totalorder %s1066_s11, %s838_s18  ;;  %p842_p4 = scmp.lt.u32.totalorder %s838_s18, %s1066_s11 }
 0x422   :  { %p844_p5 = pnand %p842_p4, %p839_p3 }
 0x424   :  { %847 = shalt.err (!%p844_p5)
}
 0x425   :  { %590 = dma.vmem_to_hbm [thread:$0]  %s588_s10, 128, %s1066_s11, [#allocation4]  }
 0x426   :  { %854 = dma.done.wait [#allocation4], 128  }
 0x427   :  { %855 = vsyncadd [#allocation4], 4294967168 }
 0x428   :  { %594 = vsyncpa [#allocation3], 1 }
 0x429   :  { %595 = vsyncpa [#allocation6], 1 }
 0x42a   :  { %596 = vsyncpa [#allocation9], 1 }
 0x42b   :  { %597 = vsyncpa [#allocation4], 1 }

// kernel: tpu_custom_call.1
= control target key start
LH: loop header
LB: loop body
LE: loop exit
PB: predicated region body
PF: predicated region fallthrough
CT: control target
= control target key end

     0   :  { %16 = vsyncpa [#allocation3], 0  ;;  %s1055_s0 = inlined_call_operand.hbm [shape: f32[8,6], index: 0, kind: input, shape index: {}]   ;;  %s1056_s1 = inlined_call_operand.vmem [shape: f32[8,2], index: 1, kind: input, shape index: {}]   ;;  %s1057_s2 = inlined_call_operand.hbm [shape: f32[6,32], index: 2, kind: input, shape index: {}]   ;;  %s1058_s3 = inlined_call_operand.hbm [shape: f32[2,32], index: 3, kind: input, shape index: {}]   ;;  %s1059_s4 = inlined_call_operand.hbm [shape: f32[1,32], index: 4, kind: input, shape index: {}]   ;;  %s1060_s5 = inlined_call_operand.vmem [shape: f32[2,32,32], index: 5, kind: input, shape index: {}]   ;;  %s1061_s6 = inlined_call_operand.hbm [shape: f32[2,1,32], index: 6, kind: input, shape index: {}]   ;;  %s1062_s7 = inlined_call_operand.vmem [shape: f32[32,8], index: 7, kind: input, shape index: {}]   ;;  %s1063_s8 = inlined_call_operand.vmem [shape: f32[1,8], index: 8, kind: input, shape index: {}]   ;;  %s1064_s9 = inlined_call_operand.vmem [shape: f32[1,8], index: 9, kind: input, shape index: {}]   ;;  %s1065_s10 = inlined_call_operand.vmem [shape: f32[1,8], index: 10, kind: input, shape index: {}]   ;;  %s1066_s11 = inlined_call_operand.hbm [shape: f32[8,8], index: 11, kind: output, shape index: {}]  }
   0x1   :  { %17 = vsyncpa [#allocation6], 0 }
   0x2   :  { %18 = vsyncpa [#allocation9], 0 }
   0x3   :  { %19 = vsyncpa [#allocation4], 0  ;;  %s856_s17 = smov [#allocation5]   ;;  %s857_s19 = smov [#allocation8]  }
   0x4   :  { %s38_s18 = sshll.u32 %s856_s17, 4  ;;  %s58_s20 = sshll.u32 %s857_s19, 4  ;;  %s39_s18 = int_to_ptr.vmem [resolvable:$true] %s38_s18  ;;  %s59_s20 = int_to_ptr.vmem [resolvable:$true] %s58_s20 }
   0x5   :  { %s716_s23 = scalar_lea.hbm %s1057_s2, 128 }
   0x6   :  { %p717_p0 = scmp.ne.s32.totalorder %s1057_s2, %s716_s23  ;;  %p720_p1 = scmp.lt.u32.totalorder %s716_s23, %s1057_s2 }
   0x8   :  { %p722_p2 = pnand %p720_p1, %p717_p0 }
   0xa   :  { %725 = shalt.err (!%p722_p2)
}
   0xb   :  { %s726_s28 = scalar_lea.vmem %s39_s18, 128  ;;  %p731_p4 = scmp.lt.s32.totalorder %s39_s18, %s39_s18 }
   0xc   :  { %p727_p3 = scmp.ne.s32.totalorder %s39_s18, %s726_s28  ;;  %p732_p5 = scmp.lt.s32.totalorder %s726_s28, %s726_s28 }
   0xe   :  { %p733_p6 = por %p732_p5, %p731_p4 }
  0x10   :  { %p734_p7 = pnand %p733_p6, %p727_p3 }
  0x12   :  { %737 = shalt.err (!%p734_p7)
}
  0x13   :  { %41 = dma.hbm_to_vmem [thread:$0]  %s1057_s2, 128, %s39_s18, [#allocation6]  }
  0x14   :  { %s738_s14 = scalar_lea.hbm %s1059_s4, 16 }
  0x15   :  { %p739_p8 = scmp.ne.s32.totalorder %s1059_s4, %s738_s14  ;;  %p742_p9 = scmp.lt.u32.totalorder %s738_s14, %s1059_s4 }
  0x17   :  { %p744_p10 = pnand %p742_p9, %p739_p8 }
  0x19   :  { %747 = shalt.err (!%p744_p10)
}
  0x1a   :  { %s748_s21 = scalar_lea.vmem %s59_s20, 16  ;;  %s752_s22 = scalar_lea.vmem %s59_s20, 32 }
  0x1b   :  { %p749_p11 = scmp.ne.s32.totalorder %s59_s20, %s748_s21  ;;  %p753_p12 = scmp.lt.s32.totalorder %s59_s20, %s59_s20 }
  0x1c   :  { %p754_p13 = scmp.lt.s32.totalorder %s752_s22, %s748_s21 }
  0x1e   :  { %p755_p0 = por %p754_p13, %p753_p12 }
  0x20   :  { %p756_p1 = pnand %p755_p0, %p749_p11 }
  0x22   :  { %759 = shalt.err (!%p756_p1)
}
  0x23   :  { %61 = dma.hbm_to_vmem [thread:$0]  %s1059_s4, 16, %s59_s20, [#allocation9]  }
  0x24   :  { %s858_s23 = smov [#allocation2]   ;;  %s859_s25 = smov [#allocation7]  }
  0x25   :  { %s26_s24 = sshll.u32 %s858_s23, 4  ;;  %s48_s26 = sshll.u32 %s859_s25, 4  ;;  %s27_s24 = int_to_ptr.vmem [resolvable:$true] %s26_s24  ;;  %s49_s26 = int_to_ptr.vmem [resolvable:$true] %s48_s26 }
  0x26   :  { %s760_s29 = scalar_lea.hbm %s1055_s0, 128 }
  0x27   :  { %p761_p2 = scmp.ne.s32.totalorder %s1055_s0, %s760_s29  ;;  %p764_p3 = scmp.lt.u32.totalorder %s760_s29, %s1055_s0 }
  0x29   :  { %p766_p4 = pnand %p764_p3, %p761_p2 }
  0x2b   :  { %769 = shalt.err (!%p766_p4)
}
  0x2c   :  { %s770_s4 = scalar_lea.vmem %s27_s24, 128  ;;  %p775_p6 = scmp.lt.s32.totalorder %s27_s24, %s27_s24 }
  0x2d   :  { %p771_p5 = scmp.ne.s32.totalorder %s27_s24, %s770_s4  ;;  %p776_p7 = scmp.lt.s32.totalorder %s770_s4, %s770_s4 }
  0x2f   :  { %p777_p8 = por %p776_p7, %p775_p6 }
  0x31   :  { %p778_p9 = pnand %p777_p8, %p771_p5 }
  0x33   :  { %781 = shalt.err (!%p778_p9)
}
  0x34   :  { %29 = dma.hbm_to_vmem [thread:$0]  %s1055_s0, 128, %s27_s24, [#allocation3]  }
  0x35   :  { %s782_s19 = scalar_lea.hbm %s1058_s3, 32 }
  0x36   :  { %p783_p10 = scmp.ne.s32.totalorder %s1058_s3, %s782_s19  ;;  %p786_p11 = scmp.lt.u32.totalorder %s782_s19, %s1058_s3 }
  0x38   :  { %p788_p12 = pnand %p786_p11, %p783_p10 }
  0x3a   :  { %791 = shalt.err (!%p788_p12)
}
  0x3b   :  { %s792_s23 = scalar_lea.vmem %s49_s26, 32  ;;  %p797_p0 = scmp.lt.s32.totalorder %s49_s26, %s49_s26 }
  0x3c   :  { %p793_p13 = scmp.ne.s32.totalorder %s49_s26, %s792_s23  ;;  %p798_p1 = scmp.lt.s32.totalorder %s792_s23, %s792_s23 }
  0x3e   :  { %p799_p2 = por %p798_p1, %p797_p0 }
  0x40   :  { %p800_p3 = pnand %p799_p2, %p793_p13 }
  0x42   :  { %803 = shalt.err (!%p800_p3)
}
  0x43   :  { %51 = dma.hbm_to_vmem [thread:$0]  %s1058_s3, 32, %s49_s26, [#allocation6]  }
  0x44   :  { %s860_s25 = smov [#allocation10]   ;;  %s804_s30 = scalar_lea.hbm %s1061_s6, 32 }
  0x45   :  { %s69_s27 = sshll.u32 %s860_s25, 4  ;;  %p805_p4 = scmp.ne.s32.totalorder %s1061_s6, %s804_s30  ;;  %s70_s27 = int_to_ptr.vmem [resolvable:$true] %s69_s27 }
  0x46   :  { %p808_p5 = scmp.lt.u32.totalorder %s804_s30, %s1061_s6 }
  0x48   :  { %p810_p6 = pnand %p808_p5, %p805_p4 }
  0x4a   :  { %813 = shalt.err (!%p810_p6)
}
  0x4b   :  { %s814_s20 = scalar_lea.vmem %s70_s27, 32  ;;  %p819_p8 = scmp.lt.s32.totalorder %s70_s27, %s70_s27 }
  0x4c   :  { %p815_p7 = scmp.ne.s32.totalorder %s70_s27, %s814_s20  ;;  %p820_p9 = scmp.lt.s32.totalorder %s814_s20, %s814_s20 }
  0x4e   :  { %p821_p10 = por %p820_p9, %p819_p8 }
  0x50   :  { %p822_p11 = pnand %p821_p10, %p815_p7 }
  0x52   :  { %825 = shalt.err (!%p822_p11)
}
  0x53   :  { %s861_s3 = smov 16   ;;  %s862_s26 = smov 1  }
  0x54   :  { %75 = dma.hbm_to_vmem [thread:$0]  %s1061_s6, 32, %s70_s27, [#allocation9], %s861_s3, %s861_s3, %s862_s26  }
  0x55   :  { %848 = dma.done.wait [#allocation3], 128  }
  0x56   :  { %849 = vsyncadd [#allocation3], 4294967168 }
  0x57   :  { %850 = dma.done.wait [#allocation6], 160  }
  0x58   :  { %851 = vsyncadd [#allocation6], 4294967136 }
  0x59   :  { %852 = dma.done.wait [#allocation9], 48  }
  0x5a   :  { %853 = vsyncadd [#allocation9], 4294967248  ;;  %v863_v0 = vmov 0.0   ;;  %vm864_vm0 = vmmov 0   ;;  %vm107_vm1 = vcmask 1041408   ;;  %vm103_vm2 = vcmask 15360  }
  0x5b   :  { %634 = vmatprep.subr.mxu1 %v863_v0  ;;  %636 = vmatprep.mubr.msk.f32.mxu1 %vm864_vm0, %v863_v0  ;;  %v102_v1 = vld [vmem:[#allocation7] sm:$0x3]  ;;  %v101_v2 = vld [vmem:[%s1056_s1] sm:$0xff]  ;;  %v100_v3 = vld [vmem:[#allocation5] sm:$0x3f]  ;;  %vm185_vm3 = vcmask 1045504  }
  0x5c   :  { %652 = vmatprep.mubr.msk.f32.mxu0 %vm864_vm0, %v863_v0  ;;  %635 = vmatpush3.msk.msra.mxu1 %vm107_vm1, %v102_v1  ;;  %v99_v4 = vld [vmem:[#allocation2] sm:$0xff]  ;;  %vm181_vm4 = vcmask 48128   ;;  %v269_v6 = vld [vmem:[%s1060_s5 + $0x8] sm:$0xff]  ;;  %v865_v7 = vmov 0.0|0.0   ;;  %v270_v9 = vld [vmem:[%s1060_s5 + $0x10] sm:$0xff]  ;;  %vm279_vm5 = vcmask 261120  }
  0x5d   :  { %637 = vmatmul.mubr.msk.f32.vlgmr.msra.gmra.mrb[0].mxu1 %vm103_vm2, %v101_v2  ;;  %639 = vmatprep.subr.mxu1 %v863_v0  ;;  %v268_v5 = vld [vmem:[%s1060_s5] sm:$0xff]  ;;  %v271_v10 = vld [vmem:[%s1060_s5 + $0x18] sm:$0xff]  ;;  %v606_v13 = vld [vmem:[%s1060_s5 + $0x28] sm:$0xff]  ;;  %vm579_vm9 = vcmask 64512  }
  0x5e   :  { %640 = vmatpush3.msk.msra.mxu1 %vm185_vm3, %v100_v3  ;;  %641 = vmatprep.mubr.msk.f32.mxu1 %vm864_vm0, %v863_v0  ;;  %v678_v8 = vpack.c.bf16 %v269_v6, %v268_v5  ;;  %v681_v11 = vpack.c.bf16 %v271_v10, %v270_v9  ;;  %v605_v12 = vld [vmem:[%s1060_s5 + $0x20] sm:$0xff]  ;;  %v602_v18 = vld [vmem:[#allocation8] ss:$0 sm:$0xff]  ;;  %v608_v24 = vld [vmem:[%s1060_s5 + $0x38] sm:$0xff] }
  0x5f   :  { %677 = vmatprep.subr.bf16.mxu0 %v865_v7  ;;  %683 = vmatprep.subr.bf16.mxu1 %v865_v7  ;;  %v684_v14 = vpack.c.bf16 %v606_v13, %v605_v12  ;;  %v607_v23 = vld [vmem:[%s1060_s5 + $0x30] sm:$0xff]  ;;  %v441_v26 = vld [vmem:[%s1062_s7] sm:$0xff]  ;;  %v442_v27 = vld [vmem:[%s1062_s7 + $0x8] sm:$0xff] }
  0x60   :  { %679 = vmatpush3.bf16.msra.mxu0 %v678_v8  ;;  %v687_v25 = vpack.c.bf16 %v608_v24, %v607_v23  ;;  %v690_v28 = vpack.c.bf16 %v442_v27, %v441_v26  ;;  %v603_v29 = vld [vmem:[#allocation10] ss:$0 sm:$0xff]  ;;  %v444_v35 = vld [vmem:[%s1062_s7 + $0x18] sm:$0xff]  ;;  %v609_v37 = vld [vmem:[#allocation10 + $0x1] ss:$0 sm:$0xff] }
  0x61   :  { %642 = vmatmul.mubr.msk.f32.vlgmr.msra.gmra.mrb[2].mxu1 %vm181_vm4, %v99_v4  ;;  %680 = vmatprep.subr.bf16.mxu0 %v865_v7  ;;  %v443_v34 = vld [vmem:[%s1062_s7 + $0x10] sm:$0xff]  ;;  %v611_v42 = vld [vmem:[%s1063_s8] ss:$0 sm:$0xff] }
  0x62   :  { %663 = vmatprep.mubr.msk.f32.mxu1 %vm864_vm0, %v863_v0  ;;  %685 = vmatpush3.bf16.msra.mxu1 %v684_v14  ;;  %v693_v36 = vpack.c.bf16 %v444_v35, %v443_v34  ;;  %v613_v44 = vld [vmem:[%s1064_s9] ss:$0 sm:$0xff]  ;;  %s866_s9 = smov [#allocation11]  }
  0x63   :  { %686 = vmatprep.subr.bf16.mxu1 %v865_v7  ;;  %v614_v62 = vld [vmem:[%s1065_s10] ss:$0 sm:$0xff]  ;;  %s587_s10 = sshll.u32 %s866_s9, 4  ;;  %s588_s10 = int_to_ptr.vmem [resolvable:$true] %s587_s10 }
  0x64   :  { %682 = vmatpush3.bf16.msra.mxu0 %v681_v11  ;;  %s826_s22 = scalar_lea.vmem %s588_s10, 128  ;;  %p831_p13 = scmp.lt.s32.totalorder %s588_s10, %s588_s10 }
  0x65   :  { %689 = vmatprep.subr.bf16.mxu0 %v865_v7  ;;  %p827_p12 = scmp.ne.s32.totalorder %s588_s10, %s826_s22  ;;  %p832_p0 = scmp.lt.s32.totalorder %s826_s22, %s826_s22 }
  0x66   :  { %688 = vmatpush3.bf16.msra.mxu1 %v687_v25 }
  0x67   :  { %p833_p1 = por %p832_p0, %p831_p13 }
  0x69   :  { %p834_p2 = pnand %p833_p1, %p827_p12 }
 0x130   :  { %v177_v15 = vpop.f32.mrb[0].mxu1 }
 0x131   :  { %v638_v16 = vpop.f32.mrb[1].mxu1 }
 0x134   :  { %v255_v17 = vpop.f32.mrb[2].mxu1 }
 0x135   :  { %v256_v19 = vadd.f32 %v255_v17, %v177_v15  ;;  %v643_v20 = vpop.f32.mrb[3].mxu1  ;;  %v573_v17 = vlaneseq }
 0x137   :  { %v266_v21 = vadd.f32 %v602_v18, %v256_v19  ;;  %v574_v18 = vand.u32 127, %v573_v17 }
 0x139   :  { %v267_v22 = vmax.f32 %v266_v21, 0.0  ;;  %vm575_vm8 = vcmp.ge.s32.totalorder %v574_v18, 4 }
 0x13b   :  { %653 = vmatmul.mubr.msk.f32.vlgmr.msra.gmra.mrb[0].mxu0 %vm279_vm5, %v267_v22 }
 0x13c   :  { %674 = vmatprep.mubr.msk.f32.mxu0 %vm864_vm0, %v863_v0  ;;  %691 = vmatpush3.bf16.msra.mxu0 %v690_v28 }
 0x13d   :  { %692 = vmatprep.subr.bf16.mxu0 %v865_v7 }
 0x140   :  { %694 = vmatpush3.bf16.msra.mxu0 %v693_v36 }
 0x20e   :  { %v349_v30 = vpop.f32.mrb[0].mxu0 }
 0x20f   :  { %v350_v31 = vadd.f32 %v603_v29, %v349_v30  ;;  %v654_v32 = vpop.f32.mrb[1].mxu0 }
 0x211   :  { %v353_v33 = vmax.f32 %v350_v31, 0.0 }
 0x213   :  { %664 = vmatmul.mubr.msk.f32.vlgmr.msra.gmra.mrb[4].mxu1 %vm279_vm5, %v353_v33 }
 0x2e6   :  { %v436_v38 = vpop.f32.mrb[4].mxu1 }
 0x2e7   :  { %v437_v39 = vadd.f32 %v609_v37, %v436_v38  ;;  %v665_v40 = vpop.f32.mrb[5].mxu1 }
 0x2e9   :  { %v440_v41 = vmax.f32 %v437_v39, 0.0 }
 0x2eb   :  { %675 = vmatmul.mubr.msk.f32.vlgmr.msra.gmra.mrb[2].mxu0 %vm279_vm5, %v440_v41 }
 0x3be   :  { %v521_v43 = vpop.f32.mrb[2].mxu0 }
 0x3bf   :  { %v522_v45 = vadd.f32 %v611_v42, %v521_v43  ;;  %v676_v46 = vpop.f32.mrb[3].mxu0 }
 0x3c1   :  { %v533_v47 = vsub.f32 %v613_v44, %v522_v45 }
 0x3c3   :  { %v535_v48 = vand.u32 2147483647, %v533_v47  ;;  %v534_v59 = vmax.f32 %v533_v47, 0.0 }
 0x3c5   :  { %v536_v49 = vsub.f32 0.0, %v535_v48 }
 0x3c7   :  { %v537_v50 = vmul.f32 1.442695, %v536_v49 }
 0x3c9   :  { %706 = vpow2.f32 %v537_v50 }
 0x3d3   :  { %v707_v51 = vpop.eup %706 }
 0x3d4   :  { %v539_v52 = vadd.f32 1.0, %v707_v51  ;;  %v542_v53 = vmul.f32 -0.5, %v707_v51  ;;  %v545_v55 = vand.u32 2147483647, %v707_v51 }
 0x3d6   :  { %708 = vlog2.f32 %v539_v52  ;;  %v543_v54 = vadd.f32 1.0, %v542_v53  ;;  %vm546_vm6 = vcmp.lt.f32.partialorder %v545_v55, 0.0004427343 }
 0x3d8   :  { %v544_v58 = vmul.f32 %v707_v51, %v543_v54 }
 0x3e0   :  { %v709_v56 = vpop.eup %708 }
 0x3e1   :  { %v541_v57 = vmul.f32 0.6931472, %v709_v56 }
 0x3e3   :  { %v547_v60 = vsel %vm546_vm6, %v544_v58, %v541_v57 }
 0x3e4   :  { %v548_v61 = vadd.f32 %v547_v60, %v534_v59 }
 0x3e6   :  { %v549_v63 = vsub.f32 %v613_v44, %v548_v61 }
 0x3e8   :  { %v556_v0 = vsub.f32 %v549_v63, %v614_v62 }
 0x3ea   :  { %v558_v1 = vand.u32 2147483647, %v556_v0  ;;  %v557_v12 = vmax.f32 %v556_v0, 0.0 }
 0x3ec   :  { %v559_v2 = vsub.f32 0.0, %v558_v1 }
 0x3ee   :  { %v560_v3 = vmul.f32 1.442695, %v559_v2 }
 0x3f0   :  { %710 = vpow2.f32 %v560_v3 }
 0x3fa   :  { %v711_v4 = vpop.eup %710 }
 0x3fb   :  { %v562_v5 = vadd.f32 1.0, %v711_v4  ;;  %v565_v6 = vmul.f32 -0.5, %v711_v4  ;;  %v568_v8 = vand.u32 2147483647, %v711_v4 }
 0x3fd   :  { %712 = vlog2.f32 %v562_v5  ;;  %v566_v7 = vadd.f32 1.0, %v565_v6  ;;  %vm569_vm7 = vcmp.lt.f32.partialorder %v568_v8, 0.0004427343 }
 0x3ff   :  { %v567_v11 = vmul.f32 %v711_v4, %v566_v7 }
 0x407   :  { %v713_v9 = vpop.eup %712 }
 0x408   :  { %v564_v10 = vmul.f32 0.6931472, %v713_v9 }
 0x40a   :  { %v570_v13 = vsel %vm569_vm7, %v567_v11, %v564_v10 }
 0x40b   :  { %v571_v14 = vadd.f32 %v570_v13, %v557_v12 }
 0x40d   :  { %v572_v15 = vadd.f32 %v614_v62, %v571_v14 }
 0x40f   :  { %v576_v16 = vmul.f32 1.442695, %v572_v15 }
 0x411   :  { %714 = vpow2.f32 %v576_v16 }
 0x41b   :  { %v715_v19 = vpop.eup %714 }
 0x41c   :  { %v578_v20 = vsel %vm575_vm8, %v715_v19, %v522_v45 }
 0x41d   :  { %580 = vst.msk [vmem:[#allocation11] sm:$0xff] %vm579_vm9, %v578_v20 }
 0x41e   :  { %837 = shalt.err (!%p834_p2)
}
 0x41f   :  { %s838_s18 = scalar_lea.hbm %s1066_s11, 128 }
 0x420   :  { %p839_p3 = scmp.ne.s32.totalorder %s1066_s11, %s838_s18  ;;  %p842_p4 = scmp.lt.u32.totalorder %s838_s18, %s1066_s11 }
 0x422   :  { %p844_p5 = pnand %p842_p4, %p839_p3 }
 0x424   :  { %847 = shalt.err (!%p844_p5)
}
 0x425   :  { %590 = dma.vmem_to_hbm [thread:$0]  %s588_s10, 128, %s1066_s11, [#allocation4]  }
 0x426   :  { %854 = dma.done.wait [#allocation4], 128  }
 0x427   :  { %855 = vsyncadd [#allocation4], 4294967168 }
 0x428   :  { %594 = vsyncpa [#allocation3], 1 }
 0x429   :  { %595 = vsyncpa [#allocation6], 1 }
 0x42a   :  { %596 = vsyncpa [#allocation9], 1 }
 0x42b   :  { %597 = vsyncpa [#allocation4], 1 }

</bundles_post_ra>
